<compile_context>
chip_gen: v7x
topology: tpu7x:2x2x1
jax: 0.10.0
libtpu: 0.0.40
codegen_flags: <defaults>
</compile_context>

<pallas_src>
import functools

import jax
import jax.numpy as jnp
from jax import lax
from jax.experimental import pallas as pl
from jax.experimental.pallas import tpu as pltpu


LANES = 128
SUBLANES = 8
MAX_TILE_ROWS = 2048        # (2048, 128) f32 tile = 1 MiB
MAX_SPLITS = 2              # leading 'parallel' grid axis -> megacore on v7x
VMEM_LIMIT_BYTES = 32 * 1024 * 1024


def _round_up(x, m):
    return (x + m - 1) // m * m


def _smooth_l1_acc_kernel(*refs, beta, rows, tile_rows, steps, has_weight,
                          needs_mask):
    """Accumulate weighted smooth-L1 and pred**2 into per-split VMEM blocks."""
    if has_weight:
        pred_ref, target_ref, weight_ref, loss_acc_ref, sq_acc_ref = refs
    else:
        pred_ref, target_ref, loss_acc_ref, sq_acc_ref = refs
        weight_ref = None

    i = pl.program_id(1)   # step within split

    @pl.when(i == 0)
    def _init():
        loss_acc_ref[...] = jnp.zeros_like(loss_acc_ref)
        sq_acc_ref[...] = jnp.zeros_like(sq_acc_ref)

    p = pred_ref[...].astype(jnp.float32)
    t = target_ref[...].astype(jnp.float32)

    diff = jnp.abs(p - t)
    loss = jnp.where(diff < beta,
                     (0.5 / beta) * diff * diff,
                     diff - 0.5 * beta)
    if weight_ref is not None:
        loss = loss * weight_ref[...].astype(jnp.float32)

    sq = p * p

    if needs_mask:
        # Mask out (a) the partial tail tile and (b) clamped duplicate tiles
        # when num_tiles does not divide evenly across splits/steps.  The
        # select also squashes any garbage (NaN/Inf) in out-of-range rows.
        c = pl.program_id(0)
        row0 = (c * steps + i) * tile_rows
        row_ids = row0 + lax.broadcasted_iota(jnp.int32, (tile_rows, LANES), 0)
        valid = row_ids < rows
        loss = jnp.where(valid, loss, 0.0)
        sq = jnp.where(valid, sq, 0.0)

    loss_acc_ref[...] += loss
    sq_acc_ref[...] += sq


def _to_lane_rows(x):
    """View x as [rows, 128] with rows a multiple of 8. Free when aligned."""
    total = x.size
    chunk = LANES * SUBLANES
    if total % chunk == 0:
        return x.reshape(total // LANES, LANES)      # free, no HBM copy
    # TODO(synk): ragged sizes need one zero-pad copy to become a lane-dense
    # (8,128)-aligned slab; the zero padding contributes exactly 0 to both sums.
    padded = _round_up(total, chunk)
    flat = jnp.pad(x.reshape(-1), (0, padded - total))
    return flat.reshape(padded // LANES, LANES)


def _reduction_sums(pred, target, weight, beta):
    """Returns (sum(weight*smooth_l1(pred,target)), sum(pred**2))."""
    pred2d = _to_lane_rows(pred)
    target2d = _to_lane_rows(target)
    rows = pred2d.shape[0]                 # multiple of 8

    has_weight = weight is not None
    inputs = [pred2d, target2d]
    if has_weight:
        if weight.shape != pred.shape:
            # TODO(synk): broadcasting materializes a full-size weight in HBM;
            # mmdet callers pass weight with pred's shape, so this is rare.
            weight = jnp.broadcast_to(weight, pred.shape)
        inputs.append(_to_lane_rows(weight))

    tile_rows = min(MAX_TILE_ROWS, rows)   # both multiples of 8
    num_tiles = pl.cdiv(rows, tile_rows)
    splits = max(1, min(MAX_SPLITS, num_tiles))   # no wasted duplicate tiles
    steps = pl.cdiv(num_tiles, splits)
    needs_mask = (rows % tile_rows != 0) or (splits * steps != num_tiles)

    def in_map(c, i):
        # Clamp so duplicated (masked-out) trailing steps stay in-bounds.
        return (jnp.minimum(c * steps + i, num_tiles - 1), 0)

    def out_map(c, i):
        return (c, 0)

    in_spec = pl.BlockSpec((tile_rows, LANES), in_map)
    acc_spec = pl.BlockSpec((tile_rows, LANES), out_map)
    acc_shape = jax.ShapeDtypeStruct((splits * tile_rows, LANES), jnp.float32)

    kernel = functools.partial(
        _smooth_l1_acc_kernel, beta=float(beta), rows=rows,
        tile_rows=tile_rows, steps=steps, has_weight=has_weight,
        needs_mask=needs_mask)

    loss_acc, sq_acc = pl.pallas_call(
        kernel,
        out_shape=(acc_shape, acc_shape),
        grid_spec=pl.GridSpec(
            grid=(splits, steps),
            in_specs=[in_spec] * len(inputs),
            out_specs=(acc_spec, acc_spec),
        ),
        compiler_params=pltpu.CompilerParams(
            dimension_semantics=("parallel", "arbitrary"),
            vmem_limit_bytes=VMEM_LIMIT_BYTES),
    )(*inputs)

    # Tiny final cross-lane/sublane reduction done once, outside the hot loop.
    return jnp.sum(loss_acc), jnp.sum(sq_acc)


class SmoothL1GLoss:
    """JAX/Pallas port of mmdet SmoothL1GLoss forward."""

    def __init__(self, beta=1.0, reduction='mean', loss_weight=1.0,
                 penalty_weight=1.0):
        self.beta = beta
        self.reduction = reduction
        self.loss_weight = loss_weight
        self.penalty_weight = penalty_weight

    def __call__(self, pred, target, weight=None, avg_factor=None,
                 reduction_override=None):
        if weight is not None:
            # Data-dependent early return (matches the torch branch). Only
            # possible when `weight` is concrete (eager mode).
            try:
                all_nonpos = not bool(jnp.any(weight > 0))
            except jax.errors.ConcretizationTypeError:
                # TODO(synk): under jit the torch data-dependent early-return
                # branch cannot be traced; it is skipped.
                all_nonpos = False
            if all_nonpos:
                w = weight
                if pred.ndim == w.ndim + 1:
                    w = jnp.expand_dims(w, 1)
                return jnp.sum(pred * w)

        assert reduction_override in (None, 'none', 'mean', 'sum')
        reduction = reduction_override if reduction_override else self.reduction
        # TODO(synk): reduction='none' yields an elementwise tensor and the
        # scalar `loss_bbox - reg_penalty <= 0` branch is ill-defined for it
        # (torch would error too); only 'mean'/'sum' are supported here.
        assert reduction in ('mean', 'sum')

        loss_sum, sq_sum = _reduction_sums(pred, target, weight, self.beta)

        n = pred.size
        if reduction == 'mean':
            denom = avg_factor if avg_factor is not None else n
            loss = loss_sum / denom
        else:  # 'sum'
            loss = loss_sum

        loss_bbox = self.loss_weight * loss
        reg_penalty = self.penalty_weight * (sq_sum / n)
        return jnp.where(loss_bbox - reg_penalty <= 0,
                         loss_bbox, loss_bbox - reg_penalty)


def _reference(pred, target, weight, beta, reduction, loss_weight,
               penalty_weight, avg_factor=None):
    """Pure-jnp reference for a sanity check."""
    diff = jnp.abs(pred.astype(jnp.float32) - target.astype(jnp.float32))
    loss = jnp.where(diff < beta, 0.5 * diff * diff / beta, diff - 0.5 * beta)
    if weight is not None:
        loss = loss * weight.astype(jnp.float32)
    if reduction == 'mean':
        denom = avg_factor if avg_factor is not None else pred.size
        loss = jnp.sum(loss) / denom
    else:
        loss = jnp.sum(loss)
    loss_bbox = loss_weight * loss
    reg_penalty = penalty_weight * jnp.mean(pred.astype(jnp.float32) ** 2)
    return jnp.where(loss_bbox - reg_penalty <= 0,
                     loss_bbox, loss_bbox - reg_penalty)


if __name__ == "__main__":
    key = jax.random.PRNGKey(0)
    k1, k2, k3, k4, k5, k6 = jax.random.split(key, 6)

    # Small bbox-regression-style shape (NCHW-ish), (8*128)-aligned size.
    shape = (2, 4, 16, 16)
    pred = jax.random.normal(k1, shape, dtype=jnp.float32)
    target = jax.random.normal(k2, shape, dtype=jnp.float32)
    weight = jax.random.uniform(k3, shape, dtype=jnp.float32)

    loss_mod = SmoothL1GLoss(beta=1.0, reduction='mean',
                             loss_weight=1.0, penalty_weight=1.0)

    # Weighted, mean reduction (weighted kernel, aligned / no-mask path).
    out = loss_mod(pred, target, weight=weight)
    jax.block_until_ready(out)
    ref = _reference(pred, target, weight, 1.0, 'mean', 1.0, 1.0)
    assert jnp.allclose(out, ref, rtol=1e-5, atol=1e-6), (out, ref)

    # No-weight, sum reduction (specialized no-weight kernel).
    out2 = loss_mod(pred, target, reduction_override='sum')
    jax.block_until_ready(out2)
    ref2 = _reference(pred, target, None, 1.0, 'sum', 1.0, 1.0)
    assert jnp.allclose(out2, ref2, rtol=1e-5, atol=1e-5), (out2, ref2)

    # jit-traced no-weight path.
    out3 = jax.jit(lambda p, t: loss_mod(p, t))(pred, target)
    jax.block_until_ready(out3)
    ref3 = _reference(pred, target, None, 1.0, 'mean', 1.0, 1.0)
    assert jnp.allclose(out3, ref3, rtol=1e-5, atol=1e-6), (out3, ref3)

    # Ragged (non 8*128-aligned) size exercises the zero-pad fallback.
    rshape = (3, 5, 7)
    rpred = jax.random.normal(k4, rshape, dtype=jnp.float32)
    rtarget = jax.random.normal(k5, rshape, dtype=jnp.float32)
    rweight = jax.random.uniform(k6, rshape, dtype=jnp.float32)
    out4 = loss_mod(rpred, rtarget, weight=rweight)
    jax.block_until_ready(out4)
    ref4 = _reference(rpred, rtarget, rweight, 1.0, 'mean', 1.0, 1.0)
    assert jnp.allclose(out4, ref4, rtol=1e-5, atol=1e-6), (out4, ref4)

    print("KERNEL_OK")
</pallas_src>

<mosaic_0001>
module attributes {stable_mosaic.version = 11 : i64} {
  func.func @_smooth_l1_acc_kernel(%arg0: i32, %arg1: i32, %arg2: memref<16x128xf32, #tpu.memory_space<vmem>>, %arg3: memref<16x128xf32, #tpu.memory_space<vmem>>, %arg4: memref<16x128xf32, #tpu.memory_space<vmem>>, %arg5: memref<16x128xf32, #tpu.memory_space<vmem>>, %arg6: memref<16x128xf32, #tpu.memory_space<vmem>>) attributes {dimension_semantics = [#tpu.dimension_semantics<parallel>, #tpu.dimension_semantics<arbitrary>], iteration_bounds = array<i64: 1, 1>, scalar_prefetch = 0 : i64, scratch_operands = 0 : i64, tpu.core_type = #tpu.core_type<tc>, window_params = [{transform_indices = @transform_0, window_bounds = array<i64: 16, 128>}, {transform_indices = @transform_1, window_bounds = array<i64: 16, 128>}, {transform_indices = @transform_2, window_bounds = array<i64: 16, 128>}, {transform_indices = @transform_3, window_bounds = array<i64: 16, 128>}, {transform_indices = @transform_4, window_bounds = array<i64: 16, 128>}]} {
    %c0_i32 = arith.constant 0 : i32
    %0 = arith.cmpi eq, %arg1, %c0_i32 : i32
    %1 = arith.extui %0 : i1 to i32
    %c0_i32_0 = arith.constant 0 : i32
    %2 = arith.cmpi ne, %1, %c0_i32_0 : i32
    scf.if %2 {
      %cst_16 = arith.constant 0.000000e+00 : f32
      %24 = vector.broadcast %cst_16 : f32 to vector<16x128xf32>
      %c0_17 = arith.constant 0 : index
      %c0_18 = arith.constant 0 : index
      %25 = vector.load %arg5[%c0_17, %c0_18] : memref<16x128xf32, #tpu.memory_space<vmem>>, vector<16x128xf32>
      tpu.vector_store %arg5[%c0_17, %c0_18], %24 {strides = array<i32>} : memref<16x128xf32, #tpu.memory_space<vmem>>, vector<16x128xf32>,
      %cst_19 = arith.constant 0.000000e+00 : f32
      %26 = vector.broadcast %cst_19 : f32 to vector<16x128xf32>
      %c0_20 = arith.constant 0 : index
      %c0_21 = arith.constant 0 : index
      %27 = vector.load %arg6[%c0_20, %c0_21] : memref<16x128xf32, #tpu.memory_space<vmem>>, vector<16x128xf32>
      tpu.vector_store %arg6[%c0_20, %c0_21], %26 {strides = array<i32>} : memref<16x128xf32, #tpu.memory_space<vmem>>, vector<16x128xf32>,
    } else {
    }
    %c0 = arith.constant 0 : index
    %c0_1 = arith.constant 0 : index
    %3 = vector.load %arg2[%c0, %c0_1] : memref<16x128xf32, #tpu.memory_space<vmem>>, vector<16x128xf32>
    %c0_2 = arith.constant 0 : index
    %c0_3 = arith.constant 0 : index
    %4 = vector.load %arg3[%c0_2, %c0_3] : memref<16x128xf32, #tpu.memory_space<vmem>>, vector<16x128xf32>
    %5 = arith.subf %3, %4 : vector<16x128xf32>
    %6 = math.absf %5 : vector<16x128xf32>
    %cst = arith.constant 1.000000e+00 : f32
    %7 = vector.broadcast %cst : f32 to vector<16x128xf32>
    %8 = arith.cmpf olt, %6, %7 : vector<16x128xf32>
    %cst_4 = arith.constant 5.000000e-01 : f32
    %9 = vector.broadcast %cst_4 : f32 to vector<16x128xf32>
    %10 = arith.mulf %9, %6 : vector<16x128xf32>
    %11 = arith.mulf %10, %6 : vector<16x128xf32>
    %cst_5 = arith.constant 5.000000e-01 : f32
    %12 = vector.broadcast %cst_5 : f32 to vector<16x128xf32>
    %13 = arith.subf %6, %12 : vector<16x128xf32>
    %14 = arith.select %8, %11, %13 : vector<16x128xi1>, vector<16x128xf32>
    %c0_6 = arith.constant 0 : index
    %c0_7 = arith.constant 0 : index
    %15 = vector.load %arg4[%c0_6, %c0_7] : memref<16x128xf32, #tpu.memory_space<vmem>>, vector<16x128xf32>
    %16 = arith.mulf %14, %15 : vector<16x128xf32>
    %17 = arith.mulf %3, %3 : vector<16x128xf32>
    %c0_8 = arith.constant 0 : index
    %c0_9 = arith.constant 0 : index
    %18 = vector.load %arg5[%c0_8, %c0_9] : memref<16x128xf32, #tpu.memory_space<vmem>>, vector<16x128xf32>
    %19 = arith.addf %18, %16 : vector<16x128xf32>
    %c0_10 = arith.constant 0 : index
    %c0_11 = arith.constant 0 : index
    %20 = vector.load %arg5[%c0_10, %c0_11] : memref<16x128xf32, #tpu.memory_space<vmem>>, vector<16x128xf32>
    tpu.vector_store %arg5[%c0_10, %c0_11], %19 {strides = array<i32>} : memref<16x128xf32, #tpu.memory_space<vmem>>, vector<16x128xf32>,
    %c0_12 = arith.constant 0 : index
    %c0_13 = arith.constant 0 : index
    %21 = vector.load %arg6[%c0_12, %c0_13] : memref<16x128xf32, #tpu.memory_space<vmem>>, vector<16x128xf32>
    %22 = arith.addf %21, %17 : vector<16x128xf32>
    %c0_14 = arith.constant 0 : index
    %c0_15 = arith.constant 0 : index
    %23 = vector.load %arg6[%c0_14, %c0_15] : memref<16x128xf32, #tpu.memory_space<vmem>>, vector<16x128xf32>
    tpu.vector_store %arg6[%c0_14, %c0_15], %22 {strides = array<i32>} : memref<16x128xf32, #tpu.memory_space<vmem>>, vector<16x128xf32>,
    return
  }
  func.func @transform_0(%arg0: i32, %arg1: i32) -> (i32, i32) {
    %c1_i32 = arith.constant 1 : i32
    %0 = arith.muli %arg0, %c1_i32 : i32
    %1 = arith.addi %0, %arg1 : i32
    %c0_i32 = arith.constant 0 : i32
    %2 = arith.minsi %1, %c0_i32 : i32
    %c0_i32_0 = arith.constant 0 : i32
    %c0_i32_1 = arith.constant 0 : i32
    return %2, %c0_i32_0 : i32, i32
  }
  func.func @transform_1(%arg0: i32, %arg1: i32) -> (i32, i32) {
    %c1_i32 = arith.constant 1 : i32
    %0 = arith.muli %arg0, %c1_i32 : i32
    %1 = arith.addi %0, %arg1 : i32
    %c0_i32 = arith.constant 0 : i32
    %2 = arith.minsi %1, %c0_i32 : i32
    %c0_i32_0 = arith.constant 0 : i32
    %c0_i32_1 = arith.constant 0 : i32
    return %2, %c0_i32_0 : i32, i32
  }
  func.func @transform_2(%arg0: i32, %arg1: i32) -> (i32, i32) {
    %c1_i32 = arith.constant 1 : i32
    %0 = arith.muli %arg0, %c1_i32 : i32
    %1 = arith.addi %0, %arg1 : i32
    %c0_i32 = arith.constant 0 : i32
    %2 = arith.minsi %1, %c0_i32 : i32
    %c0_i32_0 = arith.constant 0 : i32
    %c0_i32_1 = arith.constant 0 : i32
    return %2, %c0_i32_0 : i32, i32
  }
  func.func @transform_3(%arg0: i32, %arg1: i32) -> (i32, i32) {
    %c0_i32 = arith.constant 0 : i32
    %c0_i32_0 = arith.constant 0 : i32
    return %arg0, %c0_i32 : i32, i32
  }
  func.func @transform_4(%arg0: i32, %arg1: i32) -> (i32, i32) {
    %c0_i32 = arith.constant 0 : i32
    %c0_i32_0 = arith.constant 0 : i32
    return %arg0, %c0_i32 : i32, i32
  }
}

</mosaic_0001>

<bundles_post_ra>
// kernel: tpu_custom_call.1
= control target key start
LH: loop header
LB: loop body
LE: loop exit
PB: predicated region body
PF: predicated region fallthrough
CT: control target
= control target key end

     0   :  { %10 = vsyncpa [#allocation3], 0  ;;  %s417_s0 = inlined_call_operand.hbm [shape: f32[16,128], index: 0, kind: input, shape index: {}]   ;;  %s418_s1 = inlined_call_operand.hbm [shape: f32[16,128], index: 1, kind: input, shape index: {}]   ;;  %s419_s2 = inlined_call_operand.hbm [shape: f32[16,128], index: 2, kind: input, shape index: {}]   ;;  %s420_s3 = inlined_call_operand.hbm [shape: f32[16,128], index: 3, kind: output, shape index: {0}]   ;;  %s421_s4 = inlined_call_operand.hbm [shape: f32[16,128], index: 4, kind: output, shape index: {1}]  }
   0x1   :  { %11 = vsyncpa [#allocation6], 0 }
   0x2   :  { %12 = vsyncpa [#allocation4], 0 }
   0x3   :  { %13 = vsyncpa [#allocation10], 0  ;;  %s301_s15 = smov [#allocation5]   ;;  %s302_s17 = smov [#allocation2]  }
   0x4   :  { %s43_s16 = sshll.u32 %s301_s15, 4  ;;  %s25_s18 = sshll.u32 %s302_s17, 4  ;;  %s44_s16 = int_to_ptr.vmem [resolvable:$true] %s43_s16  ;;  %s333_s18 = int_to_ptr.vmem [resolvable:$true] %s25_s18 }
   0x5   :  { %s183_s21 = scalar_lea.hbm %s418_s1, 256 }
   0x6   :  { %p184_p0 = scmp.ne.s32.totalorder %s418_s1, %s183_s21  ;;  %p187_p1 = scmp.lt.u32.totalorder %s183_s21, %s418_s1 }
   0x8   :  { %p189_p2 = pnand %p187_p1, %p184_p0 }
   0xa   :  { %192 = shalt.err (!%p189_p2)
}
   0xb   :  { %s193_s26 = scalar_lea.vmem %s44_s16, 256  ;;  %p198_p4 = scmp.lt.s32.totalorder %s44_s16, %s44_s16 }
   0xc   :  { %p194_p3 = scmp.ne.s32.totalorder %s44_s16, %s193_s26  ;;  %p199_p5 = scmp.lt.s32.totalorder %s193_s26, %s193_s26 }
   0xe   :  { %p200_p6 = por %p199_p5, %p198_p4 }
  0x10   :  { %p201_p7 = pnand %p200_p6, %p194_p3 }
  0x12   :  { %204 = shalt.err (!%p201_p7)
}
  0x13   :  { %s303_s27 = smov 128   ;;  %s304_s28 = smov 8  }
  0x14   :  { %49 = dma.hbm_to_vmem [thread:$0]  %s418_s1, 256, %s44_s16, [#allocation6], %s303_s27, %s303_s27, %s304_s28  }
  0x15   :  { %s205_s7 = scalar_lea.hbm %s417_s0, 256 }
  0x16   :  { %p206_p8 = scmp.ne.s32.totalorder %s417_s0, %s205_s7  ;;  %p209_p9 = scmp.lt.u32.totalorder %s205_s7, %s417_s0 }
  0x18   :  { %p211_p10 = pnand %p209_p9, %p206_p8 }
  0x1a   :  { %214 = shalt.err (!%p211_p10)
}
  0x1b   :  { %s215_s12 = scalar_lea.vmem %s333_s18, 256  ;;  %p220_p12 = scmp.lt.s32.totalorder %s333_s18, %s333_s18 }
  0x1c   :  { %p216_p11 = scmp.ne.s32.totalorder %s333_s18, %s215_s12  ;;  %p221_p13 = scmp.lt.s32.totalorder %s215_s12, %s215_s12 }
  0x1e   :  { %p222_p0 = por %p221_p13, %p220_p12 }
  0x20   :  { %p223_p1 = pnand %p222_p0, %p216_p11 }
  0x22   :  { %226 = shalt.err (!%p223_p1)
}
  0x23   :  { %31 = dma.hbm_to_vmem [thread:$0]  %s417_s0, 256, %s333_s18, [#allocation3], %s303_s27, %s303_s27, %s304_s28  }
  0x24   :  { %s305_s14 = smov [#allocation7]   ;;  %s227_s19 = scalar_lea.hbm %s419_s2, 256 }
  0x25   :  { %s61_s15 = sshll.u32 %s305_s14, 4  ;;  %p228_p2 = scmp.ne.s32.totalorder %s419_s2, %s227_s19  ;;  %s62_s15 = int_to_ptr.vmem [resolvable:$true] %s61_s15 }
  0x26   :  { %p231_p3 = scmp.lt.u32.totalorder %s227_s19, %s419_s2 }
  0x28   :  { %p233_p4 = pnand %p231_p3, %p228_p2 }
  0x2a   :  { %236 = shalt.err (!%p233_p4)
}
  0x2b   :  { %s237_s24 = scalar_lea.vmem %s62_s15, 256  ;;  %p242_p6 = scmp.lt.s32.totalorder %s62_s15, %s62_s15 }
  0x2c   :  { %p238_p5 = scmp.ne.s32.totalorder %s62_s15, %s237_s24  ;;  %p243_p7 = scmp.lt.s32.totalorder %s237_s24, %s237_s24 }
  0x2e   :  { %p244_p8 = por %p243_p7, %p242_p6 }
  0x30   :  { %p245_p9 = pnand %p244_p8, %p238_p5 }
  0x32   :  { %248 = shalt.err (!%p245_p9)
}
  0x33   :  { %67 = dma.hbm_to_vmem [thread:$0]  %s419_s2, 256, %s62_s15, [#allocation6], %s303_s27, %s303_s27, %s304_s28  }
  0x34   :  { %293 = dma.done.wait [#allocation3], 256  }
  0x35   :  { %294 = vsyncadd [#allocation3], 4294967040 }
  0x36   :  { %295 = dma.done.wait [#allocation6], 512  }
  0x37   :  { %296 = vsyncadd [#allocation6], 4294966784  ;;  %v97_v0 = vld [vmem:[#allocation2] sm:$0xff]  ;;  %v99_v1 = vld [vmem:[#allocation5] sm:$0xff]  ;;  %s306_s25 = smov [#allocation9]  }
  0x38   :  { %v101_v2 = vsub.f32 %v97_v0, %v99_v1  ;;  %v98_v3 = vld [vmem:[#allocation2 + $0x8] sm:$0xff]  ;;  %v100_v4 = vld [vmem:[#allocation5 + $0x8] sm:$0xff]  ;;  %v119_v5 = vmul.f32 %v97_v0, %v97_v0  ;;  %s150_s26 = sshll.u32 %s306_s25, 4  ;;  %v115_v15 = vld [vmem:[#allocation7] sm:$0xff]  ;;  %s151_s26 = int_to_ptr.vmem [resolvable:$true] %s150_s26 }
  0x39   :  { %v102_v6 = vsub.f32 %v98_v3, %v100_v4  ;;  %v120_v7 = vmul.f32 %v98_v3, %v98_v3  ;;  %s249_s2 = scalar_lea.vmem %s151_s26, 256  ;;  %p254_p11 = scmp.lt.s32.totalorder %s151_s26, %s151_s26 }
  0x3a   :  { %v103_v8 = vand.u32 2147483647, %v101_v2  ;;  %131 = vst [vmem:[#allocation9] sm:$0xff] %v119_v5  ;;  %p250_p10 = scmp.ne.s32.totalorder %s151_s26, %s249_s2  ;;  %p255_p12 = scmp.lt.s32.totalorder %s249_s2, %s249_s2 }
  0x3b   :  { %v104_v9 = vand.u32 2147483647, %v102_v6  ;;  %132 = vst [vmem:[#allocation9 + $0x8] sm:$0xff] %v120_v7 }
  0x3c   :  { %v107_v10 = vmul.f32 0.5, %v103_v8  ;;  %v173_v11 = vadd.f32 -0.5, %v103_v8  ;;  %vm105_vm0 = vcmp.lt.f32.partialorder %v103_v8, 1.0  ;;  %p256_p13 = por %p255_p12, %p254_p11 }
  0x3d   :  { %v108_v12 = vmul.f32 0.5, %v104_v9  ;;  %v174_v13 = vadd.f32 -0.5, %v104_v9  ;;  %vm106_vm1 = vcmp.lt.f32.partialorder %v104_v9, 1.0 }
  0x3e   :  { %v109_v14 = vmul.f32 %v107_v10, %v103_v8  ;;  %p257_p0 = pnand %p256_p13, %p250_p10 }
  0x40   :  { %260 = shalt.err (!%p257_p0)
}
  0x41   :  { %s261_s5 = scalar_lea.hbm %s421_s4, 256 }
  0x42   :  { %p262_p1 = scmp.ne.s32.totalorder %s421_s4, %s261_s5  ;;  %p265_p2 = scmp.lt.u32.totalorder %s261_s5, %s421_s4 }
  0x44   :  { %p267_p3 = pnand %p265_p2, %p262_p1 }
  0x46   :  { %270 = shalt.err (!%p267_p3)
}
  0x47   :  { %156 = dma.vmem_to_hbm [thread:$0]  %s151_s26, 256, %s421_s4, [#allocation10], %s303_s27, %s303_s27, %s304_s28   ;;  %v110_v16 = vmul.f32 %v108_v12, %v104_v9  ;;  %v116_v17 = vld [vmem:[#allocation7 + $0x8] sm:$0xff]  ;;  %v113_v18 = vsel %vm105_vm0, %v109_v14, %v173_v11 }
  0x48   :  { %v117_v19 = vmul.f32 %v115_v15, %v113_v18  ;;  %s307_s12 = smov [#allocation8]  }
  0x49   :  { %v114_v20 = vsel %vm106_vm1, %v110_v16, %v174_v13  ;;  %s138_s1 = sshll.u32 %s307_s12, 4  ;;  %s139_s1 = int_to_ptr.vmem [resolvable:$true] %s138_s1 }
  0x4a   :  { %v118_v21 = vmul.f32 %v116_v17, %v114_v20  ;;  %125 = vst [vmem:[#allocation8] sm:$0xff] %v117_v19  ;;  %s271_s13 = scalar_lea.vmem %s139_s1, 256  ;;  %p276_p5 = scmp.lt.s32.totalorder %s139_s1, %s139_s1 }
  0x4b   :  { %p272_p4 = scmp.ne.s32.totalorder %s139_s1, %s271_s13  ;;  %p277_p6 = scmp.lt.s32.totalorder %s271_s13, %s271_s13 }
  0x4c   :  { %126 = vst [vmem:[#allocation8 + $0x8] sm:$0xff] %v118_v21 }
  0x4d   :  { %p278_p7 = por %p277_p6, %p276_p5 }
  0x4f   :  { %p279_p8 = pnand %p278_p7, %p272_p4 }
  0x51   :  { %282 = shalt.err (!%p279_p8)
}
  0x52   :  { %s283_s15 = scalar_lea.hbm %s420_s3, 256 }
  0x53   :  { %p284_p9 = scmp.ne.s32.totalorder %s420_s3, %s283_s15  ;;  %p287_p10 = scmp.lt.u32.totalorder %s283_s15, %s420_s3 }
  0x55   :  { %p289_p11 = pnand %p287_p10, %p284_p9 }
  0x57   :  { %292 = shalt.err (!%p289_p11)
}
  0x58   :  { %144 = dma.vmem_to_hbm [thread:$0]  %s139_s1, 256, %s420_s3, [#allocation4], %s303_s27, %s303_s27, %s304_s28  }
  0x59   :  { %297 = dma.done.wait [#allocation4], 256  }
  0x5a   :  { %298 = vsyncadd [#allocation4], 4294967040 }
  0x5b   :  { %299 = dma.done.wait [#allocation10], 256  }
  0x5c   :  { %300 = vsyncadd [#allocation10], 4294967040 }
  0x5d   :  { %163 = vsyncpa [#allocation3], 1 }
  0x5e   :  { %164 = vsyncpa [#allocation6], 1 }
  0x5f   :  { %165 = vsyncpa [#allocation4], 1 }
  0x60   :  { %166 = vsyncpa [#allocation10], 1 }

</bundles_post_ra>
